<compile_context>
chip_gen: v5e
topology: v5e:2x2
jax: 0.10.0
libtpu: 0.0.40
codegen_flags: <defaults>
</compile_context>

<pallas_src>
import numpy as np
import jax
import jax.numpy as jnp
from jax.experimental import pallas as pl
from jax.experimental.pallas import tpu as pltpu


# ----------------------------------------------------------------------------
# Constructor-time table (mirrors the PyTorch __init__, pad row handled by
# masking inside the kernel instead of an extra zero row).
# ----------------------------------------------------------------------------
def make_position_encoding_table(d_model, max_seq_len):
    pe = np.array(
        [
            [pos / np.power(10000, 2.0 * (j // 2) / d_model) for j in range(d_model)]
            for pos in range(max_seq_len)
        ],
        dtype=np.float64,
    ).astype(np.float32)  # torch: from_numpy(...).float() before sin/cos
    pe[:, 0::2] = np.sin(pe[:, 0::2])
    pe[:, 1::2] = np.cos(pe[:, 1::2])
    return jnp.asarray(pe)  # (max_seq_len, d_model), float32


# ----------------------------------------------------------------------------
# Kernel: one batch element per grid step.
#   len_ref : (B,) int32 in SMEM (scalar prefetch)
#   pe_ref  : (S, D) float32 sinusoidal table (resident across the grid)
#   out_ref : (1, S, D) float32 output slab for batch b
# ----------------------------------------------------------------------------
def _pos_enc_kernel(len_ref, pe_ref, out_ref):
    b = pl.program_id(0)
    seq_len = len_ref[b]                                      # scalar from SMEM
    pe = pe_ref[...]                                          # (S, D)
    row = jax.lax.broadcasted_iota(jnp.int32, pe.shape, 0)    # position index t
    # t < len  -> encoding of position t (== table row t+1 in the reference)
    # t >= len -> zero pad row
    out_ref[0] = jnp.where(row < seq_len, pe, 0.0)


def positional_encoding(input_len, pe_table):
    """input_len: (B,) int32, pe_table: (S, D) f32 -> (B, S, D) f32."""
    B = input_len.shape[0]
    S, D = pe_table.shape
    grid_spec = pltpu.PrefetchScalarGridSpec(
        num_scalar_prefetch=1,
        grid=(B,),
        in_specs=[
            # Table: same block every step -> stays resident in VMEM.
            pl.BlockSpec((S, D), lambda b, len_ref: (0, 0)),
        ],
        out_specs=pl.BlockSpec((1, S, D), lambda b, len_ref: (b, 0, 0)),
    )
    return pl.pallas_call(
        _pos_enc_kernel,
        out_shape=jax.ShapeDtypeStruct((B, S, D), jnp.float32),
        grid_spec=grid_spec,
        compiler_params=pltpu.CompilerParams(
            dimension_semantics=("parallel",)  # shard batch across TensorCores
        ),
    )(input_len.astype(jnp.int32), pe_table)


# TODO(synk): the `statement_label` branch and `len2` in the PyTorch forward are
# dead code (max_len is immediately overwritten by self.max_seq_len), so they
# are intentionally not reproduced.

if __name__ == "__main__":
    B, MAX_SEQ_LEN, D_MODEL = 4, 16, 128  # D=128 keeps output stores lane-dense

    pe_table = make_position_encoding_table(D_MODEL, MAX_SEQ_LEN)

    key = jax.random.PRNGKey(0)
    input_len = jax.random.randint(
        key, (B,), minval=0, maxval=MAX_SEQ_LEN + 1, dtype=jnp.int32
    )

    out = positional_encoding(input_len, pe_table)
    jax.block_until_ready(out)
    assert out.shape == (B, MAX_SEQ_LEN, D_MODEL)

    # Pure-JAX reference: literal replication of the PyTorch embedding lookup.
    padded = jnp.concatenate(
        [jnp.zeros((1, D_MODEL), jnp.float32), pe_table], axis=0
    )  # row 0 = pad
    pos = jnp.arange(1, MAX_SEQ_LEN + 1)
    input_pos = jnp.where(pos[None, :] <= input_len[:, None], pos[None, :], 0)
    ref = padded[input_pos]
    assert jnp.allclose(out, ref, atol=1e-6), "kernel output mismatch vs reference"

    print("KERNEL_OK")
</pallas_src>

<mosaic_0001>
module attributes {stable_mosaic.version = 11 : i64} {
  func.func @_pos_enc_kernel(%arg0: i32, %arg1: memref<4xi32, #tpu.memory_space<smem>>, %arg2: memref<16x128xf32, #tpu.memory_space<vmem>>, %arg3: memref<1x16x128xf32, #tpu.memory_space<vmem>>) attributes {dimension_semantics = [#tpu.dimension_semantics<parallel>], iteration_bounds = array<i64: 4>, scalar_prefetch = 1 : i64, scratch_operands = 0 : i64, tpu.core_type = #tpu.core_type<tc>, window_params = [{pipeline_mode = #tpu.pipeline_mode<synchronous>, transform_indices = @transform_0, window_bounds = array<i64: 16, 128>}, {transform_indices = @transform_1, window_bounds = array<i64: 1, 16, 128>}]} {
    %0 = arith.index_cast %arg0 : i32 to index
    %1 = memref.load %arg1[%0] : memref<4xi32, #tpu.memory_space<smem>>
    %c0 = arith.constant 0 : index
    %c0_0 = arith.constant 0 : index
    %2 = vector.load %arg2[%c0, %c0_0] : memref<16x128xf32, #tpu.memory_space<vmem>>, vector<16x128xf32>
    %3 = tpu.iota {dimensions = array<i32: 0>} : vector<16x128xi32>
    %4 = vector.broadcast %1 : i32 to vector<16x128xi32>
    %5 = arith.cmpi slt, %3, %4 : vector<16x128xi32>
    %cst = arith.constant 0.000000e+00 : f32
    %6 = vector.broadcast %cst : f32 to vector<16x128xf32>
    %7 = arith.select %5, %2, %6 : vector<16x128xi1>, vector<16x128xf32>
    %c0_1 = arith.constant 0 : index
    %c0_2 = arith.constant 0 : index
    %c0_3 = arith.constant 0 : index
    %8 = vector.load %arg3[%c0_1, %c0_2, %c0_3] : memref<1x16x128xf32, #tpu.memory_space<vmem>>, vector<1x16x128xf32>
    %9 = vector.shape_cast %8 : vector<1x16x128xf32> to vector<16x128xf32>
    %10 = vector.shape_cast %7 : vector<16x128xf32> to vector<1x16x128xf32>
    tpu.vector_store %arg3[%c0_1, %c0_2, %c0_3], %10 {strides = array<i32>} : memref<1x16x128xf32, #tpu.memory_space<vmem>>, vector<1x16x128xf32>,
    return
  }
  func.func @transform_0(%arg0: i32, %arg1: memref<4xi32, #tpu.memory_space<smem>>) -> (i32, i32) {
    %c0_i32 = arith.constant 0 : i32
    %c0_i32_0 = arith.constant 0 : i32
    %c0_i32_1 = arith.constant 0 : i32
    return %c0_i32, %c0_i32_0 : i32, i32
  }
  func.func @transform_1(%arg0: i32, %arg1: memref<4xi32, #tpu.memory_space<smem>>) -> (i32, i32, i32) {
    %c0_i32 = arith.constant 0 : i32
    %c0_i32_0 = arith.constant 0 : i32
    %c0_i32_1 = arith.constant 0 : i32
    return %arg0, %c0_i32, %c0_i32_0 : i32, i32, i32
  }
}

</mosaic_0001>

<bundles_post_ra>
// kernel: tpu_custom_call.1
= control target key start
LH: loop header
LB: loop body
LE: loop exit
PB: predicated region body
PF: predicated region fallthrough
CT: control target
= control target key end

     0   :  { %s391_s12 = smov [#allocation3]   ;;  %s506_s0 = inlined_call_operand.hbm [shape: s32[4], index: 0, kind: input, shape index: {}]   ;;  %s507_s1 = inlined_call_operand.hbm [shape: f32[16,128], index: 1, kind: input, shape index: {}]   ;;  %s508_s2 = inlined_call_operand.hbm [shape: f32[4,16,128], index: 2, kind: output, shape index: {}]  }
   0x1   :  { %s8_s11 = sshll.u32 %s506_s0, 4  ;;  %s9_s11 = int_to_ptr.hbm [resolvable:$true] %s8_s11 }
   0x2   :  { %11 = dma.hbm_to_smem %s9_s11, 16, %s391_s12, [#allocation2] }
   0x3   :  { %365 = dma.done.wait [#allocation2], 16 }
   0x4   :  { %366 = vsyncadd [#allocation2], 4294967280 }
   0x5   :  { %14 = sfence }
   0x6   :  { %15 = vsyncpa [#allocation5], 0 }
   0x7   :  { %16 = vsyncpa [#allocation6], 0 }
   0x8   :  { %18 = vsyncpa [#allocation6 + $0x1], 0  ;;  %s415_s13 = smov 0   ;;  %s417_s14 = smov 0  }
   0x9   :  { %s419_s15 = smov 0   ;;  %s421_s16 = smov 0  }
   0xa LB: > { %s436_s0 = sadd.s32 4294967295, %s389_s16   ;;  %s212_s17 = sadd.s32 4294967294, %s389_s16   ;;  %s389_s16 = sphi %s421_s16, %s514_s16   ;;  %s385_s15 = sphi %s419_s15, %s513_s15   ;;  %s381_s14 = sphi %s417_s14, %s512_s14   ;;  %s377_s13 = sphi %s415_s13, %s511_s13  }
   0xb   : > { %s440_s18 = sadd.s32 1, %s389_s16   ;;  %s52_s19 = sadd.s32 1, %s385_s15 }
   0xc   : > { %s49_s20 = ssub.s32 %s389_s16, %s440_s18  ;;  %p62_p0 = scmp.ne.s32.totalorder %s385_s15, %s381_s14 }
   0xd   : > { %p50_p1 = scmp.eq.s32.totalorder %s49_s20, 0  ;;  %p63_p2 = scmp.eq.s32.totalorder %s436_s0, 3 }
   0xe   : > { %p68_p3 = scmp.ne.s32.totalorder %s381_s14, %s377_s13  ;;  %p69_p4 = scmp.eq.s32.totalorder %s212_s17, 3 }
   0xf   : > { %s451_s21 = scalar_select %p50_p1, %s385_s15, %s52_s19  }
  0x10   : > { %p453_p5 = por %p63_p2, %p62_p0  ;;  %p457_p6 = por %p69_p4, %p68_p3 }
  0x11   : > { %p213_p7 = scmp.ge.s32.totalorder %s389_s16, 1  ;;  %p76_p8 = scmp.lt.s32.totalorder %s389_s16, 5 }
  0x12   : > { %p238_p9 = scmp.eq.s32.totalorder %s436_s0, 0  ;;  %s87_s26 = sshll.u32 %s507_s1, 4  ;;  %s88_s26 = int_to_ptr.hbm [resolvable:$true] %s87_s26 }
  0x13   : > { %p77_p10 = pnand %p213_p7, %p76_p8  ;;  %s392_s27 = smov [#allocation4]  }
  0x14   : > { %s89_s28 = sshll.u32 %s392_s27, 4  ;;  %s393_s29 = smov 128   ;;  %s90_s28 = int_to_ptr.vmem [resolvable:$true] %s89_s28 }
  0x15   : > { %p230_p11 = pneg %p77_p10  ;;  %s394_s30 = smov 8  }
  0x16   : > { %105 = sbr.rel (%p77_p10) target bundleno = 45 (0x2d), region = 24 }
  0x17   : > { %p231_p12 = pnand %p238_p9, %p230_p11 }
  0x19   : > { %233 = dma.hbm_to_vmem [thread:$0]  (!%p231_p12), %s88_s26, 256, %s90_s28, [#allocation5], %s393_s29, %s393_s29, %s394_s30  }
  0x1b   : > { %368 = dma.done.wait (%p238_p9), [#allocation5], 256  }
  0x1c   : > { %370 = vsyncadd (%p238_p9), [#allocation5], 4294967040  ;;  %s118_s3 = sand.u32 1, %s381_s14   ;;  %v124_v0 = vlaneseq  ;;  %s223_s4 = sshll.u32 %s436_s0, 4  ;;  %v122_v3 = vld [vmem:[#allocation4] sm:$0xff]  ;;  %v123_v5 = vld [vmem:[#allocation4 + $0x8] sm:$0xff] }
  0x1d   : > { %s217_s5 = sshll.u32 %s118_s3, 4  ;;  %s121_s6 = sld [smem:[#allocation3 + %s436_s0]] }
  0x1e   : > { %v125_v1 = vshrl.u32 %v124_v0, 7  ;;  %s146_s9 = scalar_lea.hbm %s508_s2, %s223_s4  ;;  %s120_s10 = scalar_lea.vmem [#allocation7], %s217_s5 }
  0x1f   : > { %s147_s11 = sshll.u32 %s120_s10, 4  ;;  %s149_s12 = sshll.u32 %s146_s9, 4  ;;  %s148_s11 = int_to_ptr.vmem [resolvable:$true] %s147_s11  ;;  %s150_s12 = int_to_ptr.hbm [resolvable:$true] %s149_s12 }
  0x20   : > { %v126_v2 = vadd.s32 8, %v125_v1  ;;  %s135_s0 = scalar_lea.sflag [#allocation6], %s118_s3  ;;  %s335_s17 = sshra.s32 %s150_s12, 4  ;;  %s336_s17 = int_to_ptr.hbm [resolvable:$true] %s335_s17 }
  0x21   : > { %s337_s19 = scalar_lea.hbm %s336_s17, 16  ;;  %s341_s25 = scalar_lea.hbm %s508_s2, 64 }
  0x22   : > { %p338_p13 = scmp.ne.s32.totalorder %s336_s17, %s337_s19  ;;  %p342_p2 = scmp.lt.s32.totalorder %s336_s17, %s508_s2 }
  0x23   : > { %v127_v4 = vstv %s121_s6  ;;  %p343_p3 = scmp.lt.s32.totalorder %s341_s25, %s337_s19 }
  0x24   : > { %vm128_vm0 = vcmp.lt.s32.totalorder %v125_v1, %v127_v4  ;;  %vm129_vm1 = vcmp.lt.s32.totalorder %v126_v2, %v127_v4  ;;  %p339_p0 = pnand %p338_p13, %p453_p5 }
  0x25   : > { %v130_v6 = vsel %vm128_vm0, %v122_v3, 0.0  ;;  %v131_v7 = vsel %vm129_vm1, %v123_v5, 0.0  ;;  %p344_p4 = por %p343_p3, %p342_p2 }
  0x26   : > { %132 = vst [vmem:[%s120_s10] sm:$0xff] %v130_v6  ;;  %p340_p1 = pneg %p339_p0 }
  0x27   : > { %133 = vst [vmem:[%s120_s10 + $0x8] sm:$0xff] %v131_v7 }
  0x28   : > { %p345_p7 = pnand %p344_p4, %p340_p1 }
  0x2a   : > { %348 = shalt.err (!%p345_p7)
}
  0x2b   : > { %s395_s28 = smov 128   ;;  %s396_s29 = smov 8  }
  0x2c   : > { %228 = dma.vmem_to_hbm [thread:$0]  (%p453_p5), %s148_s11, 256, %s150_s12, %s135_s0, %s395_s28, %s395_s28, %s396_s29  }
  0x2d PF: > { %p240_p8 = scmp.ge.s32.totalorder %s389_s16, 2  ;;  %s164_s30 = sand.u32 1, %s377_s13  }
  0x2e   : > { %s165_s3 = scalar_lea.sflag [#allocation6], %s164_s30 }
  0x2f   : > { %p235_p9 = pnand %p240_p8, %p457_p6 }
  0x31   : > { %p236_p10 = pneg %p235_p9 }
  0x33   : > { %372 = dma.done.wait (%p236_p10), %s165_s3, 256  }
  0x34   : > { %374 = vsyncadd (%p236_p10), %s165_s3, 4294967040  ;;  %p21_p11 = scmp.ge.s32.totalorder %s440_s18, 6   ;;  %s511_s13 = smov %s381_s14 }
  0x35   : > { %s512_s14 = smov %s385_s15  ;;  %s513_s15 = smov %s451_s21 }
  0x36   : > { %s514_s16 = smov %s440_s18  ;;  %23 = sbr.rel (!%p21_p11) target bundleno = 10 (0xa), region = 61 }
  0x3b   :  { %171 = vsyncpa [#allocation5], 1 }
  0x3c   :  { %173 = vsyncpa [#allocation5 + $0x1], 1 }
  0x3d   :  { %174 = vsyncpa [#allocation6], 1 }
  0x3e   :  { %176 = vsyncpa [#allocation6 + $0x1], 1 }

</bundles_post_ra>
